<compile_context>
chip_gen: v5e
topology: v5e:2x2
jax: 0.10.0
libtpu: 0.0.40
codegen_flags: <defaults>
</compile_context>

<pallas_src>
import jax
import jax.numpy as jnp
from jax import lax
from jax.experimental import pallas as pl
from jax.experimental.pallas import tpu as pltpu


# ----------------------------- kernel body -----------------------------------

def _make_kernel(act_dtype, precision):
    def kernel(x_ref, w1_ref, b1_ref, w2_ref, b2_ref, w3_ref, b3_ref, o_ref):
        mdt = w1_ref.dtype  # MXU operand dtype (bf16 for perf, f32 for exact)

        x = x_ref[...].astype(mdt)

        # Layer 1: Linear + tanh (MXU matmul, f32 accumulate; bias add in f32).
        h1 = jnp.dot(x, w1_ref[...], preferred_element_type=jnp.float32,
                     precision=precision) + b1_ref[...]
        h1 = jnp.tanh(h1.astype(act_dtype))

        # Layer 2: Linear + tanh.
        h2 = jnp.dot(h1.astype(mdt), w2_ref[...], preferred_element_type=jnp.float32,
                     precision=precision) + b2_ref[...]
        h2 = jnp.tanh(h2.astype(act_dtype))

        # Layer 3: Linear to `action` columns (no lane padding of the output).
        z = jnp.dot(h2.astype(mdt), w3_ref[...], preferred_element_type=jnp.float32,
                    precision=precision) + b3_ref[...]

        # 1 + softplus(z), numerically stable single-exp form
        # (== torch.nn.Softplus(beta=1); log(1+e) with e in (0,1] is safe).
        e = jnp.exp(-jnp.abs(z))
        sp = jnp.maximum(z, 0.0) + jnp.log(1.0 + e)
        o_ref[...] = (1.0 + sp).astype(o_ref.dtype)

    return kernel


# ----------------------------- host-side helpers ------------------------------

def _num_tensorcores():
    """Best-effort TensorCore-per-chip count; defaults to 1 (safe)."""
    try:
        info = pltpu.get_tpu_info()
        for name in ("num_cores", "core_count", "num_tensorcores",
                     "tensorcore_count", "cores_per_chip"):
            n = getattr(info, name, None)
            if isinstance(n, int) and n > 0:
                return n
    except Exception:
        pass
    try:
        n = getattr(jax.devices()[0], "num_cores", None)
        if isinstance(n, int) and n > 0:
            return n
    except Exception:
        pass
    return 1


def _default_activation_dtype(matmul_dtype):
    """bf16 tanh only where the VPU/EUP has a bf16 path (v6e/v7x)."""
    if jnp.dtype(matmul_dtype) == jnp.float32:
        return jnp.float32
    try:
        kind = jax.devices()[0].device_kind.lower()
    except Exception:
        return jnp.float32
    if ("v6" in kind) or ("v7" in kind) or ("7x" in kind):
        return jnp.bfloat16
    return jnp.float32  # v5e and older: no bf16 VPU/EUP


def _choose_batch_tiling(B, max_tile):
    """Return (num_tiles, tile_rows, padded_batch). Keeps the grid tiny."""
    if B <= max_tile:
        cores = _num_tensorcores()
        # Split across TensorCores only when each core gets substantial work
        # (>= 2048 rows); on 1-TC chips (v5e/v6e) never split a fitting batch.
        if cores >= 2 and B >= 2048 * cores and B % (8 * cores) == 0:
            return cores, B // cores, B
        return 1, B, B
    num = pl.cdiv(B, max_tile)
    tile = ((pl.cdiv(B, num)) + 7) // 8 * 8
    return num, tile, num * tile


def _vmem_limit_bytes(tile, obs, hidden, action, wbytes, act_bytes):
    """Explicit scoped-VMEM request (v5e default is only 16 MiB)."""
    x_buf = 2 * tile * obs * 4                     # double-buffered x tile
    o_buf = 2 * tile * action * 4                  # double-buffered output tile
    w_buf = (2 * ((obs + hidden) * hidden + hidden * action) * wbytes
             + 2 * (2 * hidden + action) * 4)      # weights + biases
    inter = tile * hidden * (2 * act_bytes + 16)   # h1,h2 + f32 temporaries
    est = x_buf + o_buf + w_buf + inter
    return int(min(max(2 * est, 32 << 20), 64 << 20))


def prepare_params(params, matmul_dtype=jnp.bfloat16):
    """One-time weight preparation (hoisted out of the per-call wrapper):
    cast matmul weights to the MXU operand dtype. Biases stay f32."""
    mdt = jnp.dtype(matmul_dtype)
    p = dict(params)
    for k in ("w1", "w2", "w3"):
        p[k] = params[k].astype(mdt)
    return p


# ----------------------------- forward wrapper --------------------------------

def actor_forward(x, params, *, matmul_dtype=jnp.bfloat16, activation_dtype=None,
                  out_dtype=jnp.float32, max_batch_tile=4096):
    """x: (B, obs) f32. params: dict of (in,out) weights and (1,out) biases."""
    w1, b1, w2, b2, w3, b3 = (params["w1"], params["b1"], params["w2"],
                              params["b2"], params["w3"], params["b3"])
    B, obs = x.shape
    hidden = w1.shape[1]
    action = w3.shape[1]

    mdt = jnp.dtype(matmul_dtype)
    act_dtype = (_default_activation_dtype(mdt) if activation_dtype is None
                 else jnp.dtype(activation_dtype))

    # Cast only if the caller did not pre-cast via prepare_params().
    w1m = w1 if w1.dtype == mdt else w1.astype(mdt)
    w2m = w2 if w2.dtype == mdt else w2.astype(mdt)
    w3m = w3 if w3.dtype == mdt else w3.astype(mdt)

    num_tiles, tile, Bp = _choose_batch_tiling(B, max_batch_tile)
    if Bp != B:  # only on the B > max_batch_tile path
        x = jnp.pad(x, ((0, Bp - B), (0, 0)))

    precision = lax.Precision.HIGHEST if mdt == jnp.float32 else None
    kernel = _make_kernel(act_dtype, precision)

    wbytes = mdt.itemsize
    cost = pl.CostEstimate(
        flops=int(2 * Bp * (obs * hidden + hidden * hidden + hidden * action)),
        transcendentals=int(Bp * (2 * hidden + 2 * action)),
        bytes_accessed=int(
            4 * Bp * obs                                                   # x
            + wbytes * (obs * hidden + hidden * hidden + hidden * action)  # weights
            + 4 * (2 * hidden + action)                                    # biases
            + jnp.dtype(out_dtype).itemsize * Bp * action                  # output
        ),
    )

    out = pl.pallas_call(
        kernel,
        out_shape=jax.ShapeDtypeStruct((Bp, action), out_dtype),
        grid=(num_tiles,),
        in_specs=[
            pl.BlockSpec((tile, obs), lambda i: (i, 0)),       # x tile
            pl.BlockSpec((obs, hidden), lambda i: (0, 0)),     # W1 (VMEM-resident)
            pl.BlockSpec((1, hidden), lambda i: (0, 0)),       # b1
            pl.BlockSpec((hidden, hidden), lambda i: (0, 0)),  # W2
            pl.BlockSpec((1, hidden), lambda i: (0, 0)),       # b2
            pl.BlockSpec((hidden, action), lambda i: (0, 0)),  # W3 (unpadded)
            pl.BlockSpec((1, action), lambda i: (0, 0)),       # b3 (unpadded)
        ],
        out_specs=pl.BlockSpec((tile, action), lambda i: (i, 0)),
        compiler_params=pltpu.CompilerParams(
            dimension_semantics=("parallel",),
            vmem_limit_bytes=_vmem_limit_bytes(tile, obs, hidden, action,
                                               wbytes, jnp.dtype(act_dtype).itemsize),
        ),
        cost_estimate=cost,
    )(x, w1m, b1, w2m, b2, w3m, b3)

    return out if Bp == B else out[:B]


# ----------------------------- params / reference -----------------------------

def init_params(key, observation_size, action_size, hidden=128):
    """Deterministic init mimicking PyTorch Linear default (U[-1/sqrt(fan_in), +])."""
    ks = jax.random.split(key, 6)

    def lin(kw, kb, fan_in, fan_out):
        bound = 1.0 / jnp.sqrt(jnp.float32(fan_in))
        w = jax.random.uniform(kw, (fan_in, fan_out), jnp.float32, -bound, bound)
        b = jax.random.uniform(kb, (1, fan_out), jnp.float32, -bound, bound)
        return w, b

    w1, b1 = lin(ks[0], ks[1], observation_size, hidden)
    w2, b2 = lin(ks[2], ks[3], hidden, hidden)
    w3, b3 = lin(ks[4], ks[5], hidden, action_size)
    # actor_logstd exists in the module but is not used in forward(); kept for parity.
    actor_logstd = jnp.zeros((1, action_size), jnp.float32)
    return {"w1": w1, "b1": b1, "w2": w2, "b2": b2, "w3": w3, "b3": b3,
            "actor_logstd": actor_logstd}


def actor_forward_ref(x, p):
    h1 = jnp.tanh(x @ p["w1"] + p["b1"])
    h2 = jnp.tanh(h1 @ p["w2"] + p["b2"])
    z = h2 @ p["w3"] + p["b3"]
    return 1.0 + jax.nn.softplus(z)


# ----------------------------------- main -------------------------------------

if __name__ == "__main__":
    observation_size = 32
    action_size = 8
    batch = 2

    key = jax.random.PRNGKey(0)
    kx, kp = jax.random.split(key)
    x = jax.random.normal(kx, (batch, observation_size), jnp.float32)
    params = init_params(kp, observation_size, action_size)

    ref = actor_forward_ref(x, params)

    # Exact path (f32 MXU operands + Precision.HIGHEST): tight check.
    out_f32 = jax.block_until_ready(actor_forward(x, params, matmul_dtype=jnp.float32))
    assert out_f32.shape == (batch, action_size)
    assert jnp.allclose(out_f32, ref, atol=1e-4, rtol=1e-4), "f32 path mismatch vs reference"

    # Performance default path (bf16 MXU operands pre-cast once, f32 accumulate).
    params_bf16 = prepare_params(params, jnp.bfloat16)
    out_bf16 = jax.block_until_ready(actor_forward(x, params_bf16))
    assert out_bf16.shape == (batch, action_size)
    assert jnp.allclose(out_bf16, ref, atol=3e-2, rtol=3e-2), "bf16 path mismatch vs reference"

    # Exercise the multi-tile grid path (tile split + row padding + row slice).
    xb = jax.random.normal(kx, (200, observation_size), jnp.float32)
    out_big = jax.block_until_ready(actor_forward(xb, params_bf16, max_batch_tile=64))
    assert out_big.shape == (200, action_size)
    assert jnp.allclose(out_big, actor_forward_ref(xb, params), atol=3e-2, rtol=3e-2)

    assert bool(jnp.all(out_f32 >= 1.0)) and bool(jnp.all(out_bf16 >= 1.0)), \
        "concentrations must be >= 1"

    print("KERNEL_OK")
</pallas_src>

<mosaic_0001>
module attributes {stable_mosaic.version = 11 : i64} {
  func.func @kernel(%arg0: i32, %arg1: memref<2x32xf32, #tpu.memory_space<vmem>>, %arg2: memref<32x128xf32, #tpu.memory_space<vmem>>, %arg3: memref<1x128xf32, #tpu.memory_space<vmem>>, %arg4: memref<128x128xf32, #tpu.memory_space<vmem>>, %arg5: memref<1x128xf32, #tpu.memory_space<vmem>>, %arg6: memref<128x8xf32, #tpu.memory_space<vmem>>, %arg7: memref<1x8xf32, #tpu.memory_space<vmem>>, %arg8: memref<2x8xf32, #tpu.memory_space<vmem>>) attributes {dimension_semantics = [#tpu.dimension_semantics<parallel>], iteration_bounds = array<i64: 1>, scalar_prefetch = 0 : i64, scratch_operands = 0 : i64, tpu.core_type = #tpu.core_type<tc>, window_params = [{transform_indices = @transform_0, window_bounds = array<i64: 2, 32>}, {pipeline_mode = #tpu.pipeline_mode<synchronous>, transform_indices = @transform_1, window_bounds = array<i64: 32, 128>}, {pipeline_mode = #tpu.pipeline_mode<synchronous>, transform_indices = @transform_2, window_bounds = array<i64: 1, 128>}, {pipeline_mode = #tpu.pipeline_mode<synchronous>, transform_indices = @transform_3, window_bounds = array<i64: 128, 128>}, {pipeline_mode = #tpu.pipeline_mode<synchronous>, transform_indices = @transform_4, window_bounds = array<i64: 1, 128>}, {pipeline_mode = #tpu.pipeline_mode<synchronous>, transform_indices = @transform_5, window_bounds = array<i64: 128, 8>}, {pipeline_mode = #tpu.pipeline_mode<synchronous>, transform_indices = @transform_6, window_bounds = array<i64: 1, 8>}, {transform_indices = @transform_7, window_bounds = array<i64: 2, 8>}]} {
    %c0 = arith.constant 0 : index
    %c0_0 = arith.constant 0 : index
    %0 = vector.load %arg1[%c0, %c0_0] : memref<2x32xf32, #tpu.memory_space<vmem>>, vector<2x32xf32>
    %c0_1 = arith.constant 0 : index
    %c0_2 = arith.constant 0 : index
    %1 = vector.load %arg2[%c0_1, %c0_2] : memref<32x128xf32, #tpu.memory_space<vmem>>, vector<32x128xf32>
    %cst = arith.constant dense<0.000000e+00> : vector<2x128xf32>
    %2 = tpu.matmul %0, %1, %cst {dimension_numbers = #tpu.dot_dimension_numbers<[1], [0], [0], [1], [0, 0, 1, 1], [], []>, precision = #tpu.contract_precision<fp32>} : vector<2x32xf32>, vector<32x128xf32>, vector<2x128xf32> -> vector<2x128xf32>
    %c0_3 = arith.constant 0 : index
    %c0_4 = arith.constant 0 : index
    %3 = vector.load %arg3[%c0_3, %c0_4] : memref<1x128xf32, #tpu.memory_space<vmem>>, vector<1x128xf32>
    %4 = vector.broadcast %3 : vector<1x128xf32> to vector<2x128xf32>
    %5 = arith.addf %2, %4 : vector<2x128xf32>
    %6 = math.tanh %5 : vector<2x128xf32>
    %c0_5 = arith.constant 0 : index
    %c0_6 = arith.constant 0 : index
    %7 = vector.load %arg4[%c0_5, %c0_6] : memref<128x128xf32, #tpu.memory_space<vmem>>, vector<128x128xf32>
    %cst_7 = arith.constant dense<0.000000e+00> : vector<2x128xf32>
    %8 = tpu.matmul %6, %7, %cst_7 {dimension_numbers = #tpu.dot_dimension_numbers<[1], [0], [0], [1], [0, 0, 1, 1], [], []>, precision = #tpu.contract_precision<fp32>} : vector<2x128xf32>, vector<128x128xf32>, vector<2x128xf32> -> vector<2x128xf32>
    %c0_8 = arith.constant 0 : index
    %c0_9 = arith.constant 0 : index
    %9 = vector.load %arg5[%c0_8, %c0_9] : memref<1x128xf32, #tpu.memory_space<vmem>>, vector<1x128xf32>
    %10 = vector.broadcast %9 : vector<1x128xf32> to vector<2x128xf32>
    %11 = arith.addf %8, %10 : vector<2x128xf32>
    %12 = math.tanh %11 : vector<2x128xf32>
    %c0_10 = arith.constant 0 : index
    %c0_11 = arith.constant 0 : index
    %13 = vector.load %arg6[%c0_10, %c0_11] : memref<128x8xf32, #tpu.memory_space<vmem>>, vector<128x8xf32>
    %cst_12 = arith.constant dense<0.000000e+00> : vector<2x8xf32>
    %14 = tpu.matmul %12, %13, %cst_12 {dimension_numbers = #tpu.dot_dimension_numbers<[1], [0], [0], [1], [0, 0, 1, 1], [], []>, precision = #tpu.contract_precision<fp32>} : vector<2x128xf32>, vector<128x8xf32>, vector<2x8xf32> -> vector<2x8xf32>
    %c0_13 = arith.constant 0 : index
    %c0_14 = arith.constant 0 : index
    %15 = vector.load %arg7[%c0_13, %c0_14] : memref<1x8xf32, #tpu.memory_space<vmem>>, vector<1x8xf32>
    %16 = vector.broadcast %15 : vector<1x8xf32> to vector<2x8xf32>
    %17 = arith.addf %14, %16 : vector<2x8xf32>
    %18 = math.absf %17 : vector<2x8xf32>
    %cst_15 = arith.constant 0.000000e+00 : f32
    %19 = vector.broadcast %cst_15 : f32 to vector<2x8xf32>
    %20 = arith.subf %19, %18 : vector<2x8xf32>
    %21 = math.exp %20 : vector<2x8xf32>
    %cst_16 = arith.constant 0.000000e+00 : f32
    %22 = vector.broadcast %cst_16 : f32 to vector<2x8xf32>
    %23 = arith.maximumf %17, %22 : vector<2x8xf32>
    %cst_17 = arith.constant 1.000000e+00 : f32
    %24 = vector.broadcast %cst_17 : f32 to vector<2x8xf32>
    %25 = arith.addf %24, %21 : vector<2x8xf32>
    %26 = math.log %25 : vector<2x8xf32>
    %27 = arith.addf %23, %26 : vector<2x8xf32>
    %cst_18 = arith.constant 1.000000e+00 : f32
    %28 = vector.broadcast %cst_18 : f32 to vector<2x8xf32>
    %29 = arith.addf %28, %27 : vector<2x8xf32>
    %c0_19 = arith.constant 0 : index
    %c0_20 = arith.constant 0 : index
    %30 = vector.load %arg8[%c0_19, %c0_20] : memref<2x8xf32, #tpu.memory_space<vmem>>, vector<2x8xf32>
    tpu.vector_store %arg8[%c0_19, %c0_20], %29 {strides = array<i32>} : memref<2x8xf32, #tpu.memory_space<vmem>>, vector<2x8xf32>,
    return
  }
  func.func @transform_0(%arg0: i32) -> (i32, i32) {
    %c0_i32 = arith.constant 0 : i32
    %c0_i32_0 = arith.constant 0 : i32
    return %arg0, %c0_i32 : i32, i32
  }
  func.func @transform_1(%arg0: i32) -> (i32, i32) {
    %c0_i32 = arith.constant 0 : i32
    %c0_i32_0 = arith.constant 0 : i32
    %c0_i32_1 = arith.constant 0 : i32
    return %c0_i32, %c0_i32_0 : i32, i32
  }
  func.func @transform_2(%arg0: i32) -> (i32, i32) {
    %c0_i32 = arith.constant 0 : i32
    %c0_i32_0 = arith.constant 0 : i32
    %c0_i32_1 = arith.constant 0 : i32
    return %c0_i32, %c0_i32_0 : i32, i32
  }
  func.func @transform_3(%arg0: i32) -> (i32, i32) {
    %c0_i32 = arith.constant 0 : i32
    %c0_i32_0 = arith.constant 0 : i32
    %c0_i32_1 = arith.constant 0 : i32
    return %c0_i32, %c0_i32_0 : i32, i32
  }
  func.func @transform_4(%arg0: i32) -> (i32, i32) {
    %c0_i32 = arith.constant 0 : i32
    %c0_i32_0 = arith.constant 0 : i32
    %c0_i32_1 = arith.constant 0 : i32
    return %c0_i32, %c0_i32_0 : i32, i32
  }
  func.func @transform_5(%arg0: i32) -> (i32, i32) {
    %c0_i32 = arith.constant 0 : i32
    %c0_i32_0 = arith.constant 0 : i32
    %c0_i32_1 = arith.constant 0 : i32
    return %c0_i32, %c0_i32_0 : i32, i32
  }
  func.func @transform_6(%arg0: i32) -> (i32, i32) {
    %c0_i32 = arith.constant 0 : i32
    %c0_i32_0 = arith.constant 0 : i32
    %c0_i32_1 = arith.constant 0 : i32
    return %c0_i32, %c0_i32_0 : i32, i32
  }
  func.func @transform_7(%arg0: i32) -> (i32, i32) {
    %c0_i32 = arith.constant 0 : i32
    %c0_i32_0 = arith.constant 0 : i32
    return %arg0, %c0_i32 : i32, i32
  }
}

</mosaic_0001>

<bundles_post_ra>
// kernel: tpu_custom_call.1
= control target key start
LH: loop header
LB: loop body
LE: loop exit
PB: predicated region body
PF: predicated region fallthrough
CT: control target
= control target key end

     0   :  { %12 = vsyncpa [#allocation3], 0  ;;  %s1705_s0 = inlined_call_operand.vmem [shape: f32[2,32], index: 0, kind: input, shape index: {}]   ;;  %s1706_s1 = inlined_call_operand.hbm [shape: f32[32,128], index: 1, kind: input, shape index: {}]   ;;  %s1707_s2 = inlined_call_operand.vmem [shape: f32[1,128], index: 2, kind: input, shape index: {}]   ;;  %s1708_s3 = inlined_call_operand.vmem [shape: f32[128,128], index: 3, kind: input, shape index: {}]   ;;  %s1709_s4 = inlined_call_operand.vmem [shape: f32[1,128], index: 4, kind: input, shape index: {}]   ;;  %s1710_s5 = inlined_call_operand.vmem [shape: f32[128,8], index: 5, kind: input, shape index: {}]   ;;  %s1711_s6 = inlined_call_operand.vmem [shape: f32[1,8], index: 6, kind: input, shape index: {}]   ;;  %s1712_s7 = inlined_call_operand.hbm [shape: f32[2,8], index: 7, kind: output, shape index: {}]  }
   0x1   :  { %13 = vsyncpa [#allocation4], 0  ;;  %s20_s26 = sshll.u32 %s1706_s1, 4  ;;  %s1061_s27 = smov [#allocation2]   ;;  %s21_s26 = int_to_ptr.hbm [resolvable:$true] %s20_s26 }
   0x2   :  { %s22_s28 = sshll.u32 %s1061_s27, 4  ;;  %s1062_s29 = smov 128   ;;  %s23_s28 = int_to_ptr.vmem [resolvable:$true] %s22_s28 }
   0x3   :  { %s1063_s30 = smov 8  }
   0x4   :  { %28 = dma.hbm_to_vmem [thread:$0]  %s21_s26, 512, %s23_s28, [#allocation3], %s1062_s29, %s1062_s29, %s1063_s30  }
   0x5   :  { %1057 = dma.done.wait [#allocation3], 512  }
   0x6   :  { %1058 = vsyncadd [#allocation3], 4294966784  ;;  %vm52_vm0 = vcmask 261120   ;;  %v47_v0 = vld [vmem:[#allocation2 + $0x18] sm:$0xff]  ;;  %v46_v1 = vld [vmem:[#allocation2 + $0x10] sm:$0xff]  ;;  %s984_s25 = sshll.u32 %s1712_s7, 4  ;;  %s985_s25 = int_to_ptr.hbm [resolvable:$true] %s984_s25 }
   0x7   :  { %v45_v2 = vld [vmem:[#allocation2 + $0x8] sm:$0xff]  ;;  %v1108_v3 = vand.u32 4294901760, %v47_v0  ;;  %v1110_v4 = vand.u32 4294901760, %v46_v1  ;;  %v44_v6 = vld [vmem:[#allocation2] sm:$0xff]  ;;  %v257_v10 = vld [vmem:[%s1708_s3 + $0x78] sm:$0xff]  ;;  %vm975_vm1 = vcmask 58368  }
   0x8   :  { %v1112_v5 = vand.u32 4294901760, %v45_v2  ;;  %v43_v7 = vld [vmem:[%s1705_s0] sm:$0x3]  ;;  %v1117_v8 = vand.u32 4294901760, %v44_v6  ;;  %v256_v11 = vld [vmem:[%s1708_s3 + $0x70] sm:$0xff]  ;;  %v255_v12 = vld [vmem:[%s1708_s3 + $0x68] sm:$0xff] }
   0x9   :  { %v54_v9 = vsel %vm52_vm0, %v43_v7, 0  ;;  %v98_v13 = vsub.f32 %v47_v0, %v1108_v3  ;;  %69 = vmatpush.msra.mxu0 %v1108_v3  ;;  %v1131_v14 = vsub.f32 %v46_v1, %v1110_v4  ;;  %169 = vmatpush.msra.mxu3 %v1108_v3  ;;  %v1142_v18 = vand.u32 4294901760, %v257_v10  ;;  %v254_v37 = vld [vmem:[%s1708_s3 + $0x60] sm:$0xff]  ;;  %v253_v38 = vld [vmem:[%s1708_s3 + $0x58] sm:$0xff]  ;;  %v252_v39 = vld [vmem:[%s1708_s3 + $0x50] sm:$0xff] }
   0xa   :  { %v1135_v15 = vsub.f32 %v45_v2, %v1112_v5  ;;  %v1137_v16 = vand.u32 4294901760, %v54_v9  ;;  %v1140_v17 = vsub.f32 %v44_v6, %v1117_v8  ;;  %v1144_v19 = vand.u32 4294901760, %v256_v11  ;;  %v251_v44 = vld [vmem:[%s1708_s3 + $0x48] sm:$0xff]  ;;  %v250_v49 = vld [vmem:[%s1708_s3 + $0x40] sm:$0xff]  ;;  %v249_v50 = vld [vmem:[%s1708_s3 + $0x38] sm:$0xff] }
   0xb   :  { %v1146_v20 = vand.u32 4294901760, %v255_v12  ;;  %140 = vmatpush.msra.mxu2 %v98_v13  ;;  %71 = vmatpush.msra.mxu0 %v1110_v4  ;;  %v99_v21 = vand.u32 4294901760, %v98_v13  ;;  %v105_v22 = vand.u32 4294901760, %v1131_v14  ;;  %v1155_v26 = vsub.f32 %v257_v10, %v1142_v18  ;;  %v248_v55 = vld [vmem:[%s1708_s3 + $0x30] sm:$0xff]  ;;  %v247_v56 = vld [vmem:[%s1708_s3 + $0x28] sm:$0xff] }
   0xc   :  { %v77_v23 = vsub.f32 %v54_v9, %v1137_v16  ;;  %v111_v24 = vand.u32 4294901760, %v1135_v15  ;;  %171 = vmatpush.msra.mxu3 %v1110_v4  ;;  %v117_v25 = vand.u32 4294901760, %v1140_v17  ;;  %v1158_v27 = vsub.f32 %v256_v11, %v1144_v19 }
   0xd   :  { %v1161_v28 = vsub.f32 %v255_v12, %v1146_v20  ;;  %143 = vmatpush.msra.mxu2 %v1131_v14  ;;  %v100_v29 = vsub.f32 %v98_v13, %v99_v21  ;;  %73 = vmatpush.msra.mxu0 %v1112_v5  ;;  %v106_v30 = vsub.f32 %v1131_v14, %v105_v22  ;;  %v305_v34 = vand.u32 4294901760, %v1155_v26 }
   0xe   :  { %v112_v31 = vsub.f32 %v1135_v15, %v111_v24  ;;  %v78_v32 = vand.u32 4294901760, %v77_v23  ;;  %173 = vmatpush.msra.mxu3 %v1112_v5  ;;  %v118_v33 = vsub.f32 %v1140_v17, %v117_v25  ;;  %v311_v35 = vand.u32 4294901760, %v1158_v27 }
   0xf   :  { %v317_v36 = vand.u32 4294901760, %v1161_v28  ;;  %v101_v40 = vand.u32 4294901760, %v100_v29  ;;  %146 = vmatpush.msra.mxu2 %v1135_v15  ;;  %v107_v41 = vand.u32 4294901760, %v106_v30  ;;  %75 = vmatpush.msra.mxu0 %v1117_v8  ;;  %v306_v46 = vsub.f32 %v1155_v26, %v305_v34  ;;  %v246_v29 = vld [vmem:[%s1708_s3 + $0x20] sm:$0xff]  ;;  %v245_v30 = vld [vmem:[%s1708_s3 + $0x18] sm:$0xff] }
  0x10   :  { %v113_v42 = vand.u32 4294901760, %v112_v31  ;;  %v79_v43 = vsub.f32 %v77_v23, %v78_v32  ;;  %175 = vmatpush.msra.mxu3 %v1117_v8  ;;  %v119_v45 = vand.u32 4294901760, %v118_v33  ;;  %v312_v47 = vsub.f32 %v1158_v27, %v311_v35 }
  0x11   :  { %198 = vmatpush.msrb.mxu0 %v99_v21  ;;  %v318_v48 = vsub.f32 %v1161_v28, %v317_v36  ;;  %102 = vmatpush.msra.mxu1 %v101_v40  ;;  %v1207_v52 = vand.u32 4294901760, %v254_v37  ;;  %v1209_v53 = vand.u32 4294901760, %v253_v38  ;;  %v1211_v54 = vand.u32 4294901760, %v252_v39  ;;  %v243_v40 = vld [vmem:[%s1708_s3 + $0x8] sm:$0xff] }
  0x12   :  { %149 = vmatpush.msra.mxu2 %v1140_v17  ;;  %v80_v51 = vand.u32 4294901760, %v79_v43  ;;  %179 = vmatmul.f32.vlgmr.msra.gmra.mxu3 %v78_v32  ;;  %v307_v57 = vand.u32 4294901760, %v306_v46  ;;  %v313_v58 = vand.u32 4294901760, %v312_v47  ;;  %v1219_v60 = vand.u32 4294901760, %v251_v44 }
  0x13   :  { %152 = vmatmul.f32.vlgmr.msra.gmra.mxu2 %v77_v23  ;;  %v319_v59 = vand.u32 4294901760, %v318_v48  ;;  %108 = vmatpush.msra.mxu1 %v107_v41  ;;  %v1222_v61 = vsub.f32 %v254_v37, %v1207_v52  ;;  %v1225_v62 = vsub.f32 %v253_v38, %v1209_v53  ;;  %v1228_v63 = vsub.f32 %v252_v39, %v1211_v54 }
  0x14   :  { %81 = vmatmul.f32.vlgmr.msra.gmra.mxu0 %v80_v51  ;;  %v1230_v0 = vand.u32 4294901760, %v250_v49  ;;  %308 = vmatpush.msrb.mxu3 %v307_v57  ;;  %v1233_v1 = vsub.f32 %v251_v44, %v1219_v60  ;;  %v1235_v2 = vand.u32 4294901760, %v249_v50  ;;  %v1237_v6 = vand.u32 4294901760, %v248_v55 }
  0x15   :  { %202 = vmatpush.msrb.mxu0 %v105_v22  ;;  %v1239_v7 = vand.u32 4294901760, %v247_v56  ;;  %114 = vmatpush.msra.mxu1 %v113_v42  ;;  %v323_v9 = vand.u32 4294901760, %v1222_v61  ;;  %v329_v10 = vand.u32 4294901760, %v1225_v62  ;;  %v335_v11 = vand.u32 4294901760, %v1228_v63 }
  0x16   :  { %263 = vmatpush.msrb.mxu2 %v1142_v18  ;;  %v1246_v12 = vsub.f32 %v250_v49, %v1230_v0  ;;  %314 = vmatpush.msrb.mxu3 %v313_v58  ;;  %v341_v13 = vand.u32 4294901760, %v1233_v1  ;;  %v1252_v14 = vsub.f32 %v249_v50, %v1235_v2  ;;  %v1262_v15 = vsub.f32 %v248_v55, %v1237_v6 }
  0x17   :  { %206 = vmatpush.msrb.mxu0 %v111_v24  ;;  %120 = vmatpush.msra.mxu1 %v119_v45  ;;  %v324_v21 = vsub.f32 %v1222_v61, %v323_v9  ;;  %v330_v22 = vsub.f32 %v1225_v62, %v329_v10  ;;  %v336_v23 = vsub.f32 %v1228_v63, %v335_v11  ;;  %v1293_v38 = vand.u32 4294901760, %v246_v29  ;;  %v242_v45 = vld [vmem:[%s1708_s3] sm:$0xff] }
  0x18   :  { %265 = vmatpush.msrb.mxu2 %v1144_v19  ;;  %122 = vmatmul.f32.vlgmr.msra.gmra.mxu1 %v1137_v16  ;;  %v347_v24 = vand.u32 4294901760, %v1246_v12  ;;  %v1279_v17 = vsub.f32 %v247_v56, %v1239_v7  ;;  %v342_v33 = vsub.f32 %v1233_v1, %v341_v13  ;;  %v353_v37 = vand.u32 4294901760, %v1252_v14 }
  0x19   :  { %210 = vmatpush.msrb.mxu0 %v117_v25  ;;  %229 = vmatpush.msrb.mxu1 %v1108_v3  ;;  %v325_v31 = vand.u32 4294901760, %v324_v21  ;;  %v244_v25 = vld [vmem:[%s1708_s3 + $0x10] sm:$0xff]  ;;  %v331_v32 = vand.u32 4294901760, %v330_v22  ;;  %v359_v3 = vand.u32 4294901760, %v1262_v15  ;;  %v1295_v39 = vand.u32 4294901760, %v245_v30 }
  0x1a   :  { %320 = vmatpush.msrb.mxu3 %v319_v59  ;;  %267 = vmatpush.msrb.mxu2 %v1146_v20  ;;  %v337_v41 = vand.u32 4294901760, %v336_v23  ;;  %v1304_v42 = vand.u32 4294901760, %v244_v25  ;;  %v365_v43 = vand.u32 4294901760, %v1279_v17  ;;  %v1309_v44 = vsub.f32 %v246_v29, %v1293_v38 }
  0x1b   :  { %406 = vmatpush.msra.mxu0 %v1155_v26  ;;  %231 = vmatpush.msrb.mxu1 %v1110_v4  ;;  %v348_v4 = vsub.f32 %v1246_v12, %v347_v24  ;;  %v343_v46 = vand.u32 4294901760, %v342_v33  ;;  %v354_v47 = vsub.f32 %v1252_v14, %v353_v37  ;;  %v1322_v48 = vand.u32 4294901760, %v243_v40 }
  0x1c   :  { %212 = vmatmul.f32.vlgmr.msrb.gmra.mxu0 %v1137_v16  ;;  %326 = vmatpush.msrb.mxu3 %v325_v31  ;;  %v360_v49 = vsub.f32 %v1262_v15, %v359_v3  ;;  %v371_v51 = vand.u32 4294901760, %v1309_v44  ;;  %v1332_v55 = vsub.f32 %v244_v25, %v1304_v42  ;;  %v1334_v56 = vand.u32 4294901760, %v242_v45 }
  0x1d   :  { %269 = vmatpush.msrb.mxu2 %v1207_v52  ;;  %233 = vmatpush.msrb.mxu1 %v1112_v5  ;;  %v1320_v5 = vsub.f32 %v245_v30, %v1295_v39  ;;  %v349_v50 = vand.u32 4294901760, %v348_v4  ;;  %v366_v57 = vsub.f32 %v1279_v17, %v365_v43  ;;  %v1343_v58 = vsub.f32 %v243_v40, %v1322_v48 }
  0x1e   :  { %409 = vmatpush.msra.mxu0 %v1158_v27  ;;  %332 = vmatpush.msrb.mxu3 %v331_v32  ;;  %v361_v59 = vand.u32 4294901760, %v360_v49  ;;  %v372_v21 = vsub.f32 %v1309_v44, %v371_v51  ;;  %v383_v22 = vand.u32 4294901760, %v1332_v55  ;;  %v1353_v23 = vsub.f32 %v242_v45, %v1334_v56  ;;  %v612_v49 = vld [vmem:[%s1710_s5 + $0x40] sm:$0xff] }
  0x1f   :  { %271 = vmatpush.msrb.mxu2 %v1209_v53  ;;  %235 = vmatpush.msrb.mxu1 %v1117_v8  ;;  %v355_v8 = vand.u32 4294901760, %v354_v47  ;;  %v367_v29 = vand.u32 4294901760, %v366_v57  ;;  %v389_v31 = vand.u32 4294901760, %v1343_v58  ;;  %v610_v57 = vld [vmem:[%s1710_s5 + $0x30] sm:$0xff] }
  0x20   :  { %412 = vmatpush.msra.mxu0 %v1161_v28  ;;  %237 = vmatmul.f32.vlgmr.msrb.gmra.mxu1 %v1137_v16  ;;  %v377_v16 = vand.u32 4294901760, %v1320_v5  ;;  %v373_v25 = vand.u32 4294901760, %v372_v21  ;;  %v384_v32 = vsub.f32 %v1332_v55, %v383_v22  ;;  %v395_v33 = vand.u32 4294901760, %v1353_v23 }
  0x21   :  { %338 = vmatpush.msrb.mxu3 %v337_v41  ;;  %273 = vmatpush.msrb.mxu2 %v1211_v54  ;;  %v390_v41 = vsub.f32 %v1343_v58, %v389_v31  ;;  %v1542_v21 = vand.u32 4294901760, %v612_v49 }
  0x22   :  { %459 = vmatpush.msra.mxu1 %v1142_v18  ;;  %415 = vmatpush.msra.mxu0 %v1222_v61  ;;  %v378_v30 = vsub.f32 %v1320_v5, %v377_v16  ;;  %v385_v4 = vand.u32 4294901760, %v384_v32  ;;  %v396_v45 = vsub.f32 %v1353_v23, %v395_v33 }
  0x23   :  { %344 = vmatpush.msrb.mxu3 %v343_v46  ;;  %275 = vmatpush.msrb.mxu2 %v1219_v60  ;;  %v391_v46 = vand.u32 4294901760, %v390_v41 }
  0x24   :  { %461 = vmatpush.msra.mxu1 %v1144_v19  ;;  %418 = vmatpush.msra.mxu0 %v1225_v62  ;;  %v379_v40 = vand.u32 4294901760, %v378_v30  ;;  %v397_v47 = vand.u32 4294901760, %v396_v45  ;;  %v1549_v30 = vsub.f32 %v612_v49, %v1542_v21  ;;  %v607_v49 = vld [vmem:[%s1710_s5 + $0x18] sm:$0xff] }
  0x25   :  { %350 = vmatpush.msrb.mxu3 %v349_v50  ;;  %277 = vmatpush.msrb.mxu2 %v1230_v0 }
  0x26   :  { %463 = vmatpush.msra.mxu1 %v1146_v20  ;;  %421 = vmatpush.msra.mxu0 %v1228_v63  ;;  %v709_v41 = vand.u32 4294901760, %v1549_v30 }
  0x27   :  { %356 = vmatpush.msrb.mxu3 %v355_v8  ;;  %279 = vmatpush.msrb.mxu2 %v1235_v2  ;;  %v611_v8 = vld [vmem:[%s1710_s5 + $0x38] sm:$0xff] }
  0x28   :  { %465 = vmatpush.msra.mxu1 %v1207_v52  ;;  %424 = vmatpush.msra.mxu0 %v1233_v1  ;;  %v615_v1 = vld [vmem:[%s1710_s5 + $0x58] sm:$0xff] }
  0x29   :  { %362 = vmatpush.msrb.mxu3 %v361_v59  ;;  %281 = vmatpush.msrb.mxu2 %v1237_v6 }
  0x2a   :  { %467 = vmatpush.msra.mxu1 %v1209_v53  ;;  %427 = vmatpush.msra.mxu0 %v1246_v12 }
  0x2b   :  { %368 = vmatpush.msrb.mxu3 %v367_v29  ;;  %283 = vmatpush.msrb.mxu2 %v1239_v7 }
  0x2c   :  { %469 = vmatpush.msra.mxu1 %v1211_v54  ;;  %430 = vmatpush.msra.mxu0 %v1252_v14 }
  0x2d   :  { %374 = vmatpush.msrb.mxu3 %v373_v25  ;;  %285 = vmatpush.msrb.mxu2 %v1293_v38  ;;  %v1554_v25 = vand.u32 4294901760, %v610_v57 }
  0x2e   :  { %471 = vmatpush.msra.mxu1 %v1219_v60  ;;  %433 = vmatpush.msra.mxu0 %v1262_v15 }
  0x2f   :  { %380 = vmatpush.msrb.mxu3 %v379_v40  ;;  %287 = vmatpush.msrb.mxu2 %v1295_v39  ;;  %v1565_v45 = vsub.f32 %v610_v57, %v1554_v25 }
  0x30   :  { %473 = vmatpush.msra.mxu1 %v1230_v0  ;;  %436 = vmatpush.msra.mxu0 %v1279_v17 }
  0x31   :  { %386 = vmatpush.msrb.mxu3 %v385_v4  ;;  %289 = vmatpush.msrb.mxu2 %v1304_v42 }
  0x32   :  { %475 = vmatpush.msra.mxu1 %v1235_v2  ;;  %439 = vmatpush.msra.mxu0 %v1309_v44 }
  0x33   :  { %392 = vmatpush.msrb.mxu3 %v391_v46  ;;  %291 = vmatpush.msrb.mxu2 %v1322_v48 }
  0x34   :  { %477 = vmatpush.msra.mxu1 %v1237_v6  ;;  %442 = vmatpush.msra.mxu0 %v1320_v5 }
  0x35   :  { %398 = vmatpush.msrb.mxu3 %v397_v47  ;;  %293 = vmatpush.msrb.mxu2 %v1334_v56 }
  0x36   :  { %479 = vmatpush.msra.mxu1 %v1239_v7  ;;  %445 = vmatpush.msra.mxu0 %v1332_v55 }
  0x37   :  { %567 = vmatpush.msra.mxu3 %v1142_v18  ;;  %500 = vmatpush.msra.mxu2 %v305_v34  ;;  %v998_v18 = vld [vmem:[%s1707_s2] ss:$0 sm:$0xff] }
  0x38   :  { %481 = vmatpush.msra.mxu1 %v1293_v38  ;;  %448 = vmatpush.msra.mxu0 %v1343_v58 }
  0x39   :  { %569 = vmatpush.msra.mxu3 %v1144_v19  ;;  %504 = vmatpush.msra.mxu2 %v311_v35 }
  0x3a   :  { %483 = vmatpush.msra.mxu1 %v1295_v39  ;;  %451 = vmatpush.msra.mxu0 %v1353_v23 }
  0x3b   :  { %571 = vmatpush.msra.mxu3 %v1146_v20  ;;  %508 = vmatpush.msra.mxu2 %v317_v36 }
  0x3c   :  { %485 = vmatpush.msra.mxu1 %v1304_v42 }
  0x3d   :  { %573 = vmatpush.msra.mxu3 %v1207_v52  ;;  %512 = vmatpush.msra.mxu2 %v323_v9  ;;  %v619_v52 = vld [vmem:[%s1710_s5 + $0x78] sm:$0xff] }
  0x3e   :  { %487 = vmatpush.msra.mxu1 %v1322_v48  ;;  %v1464_v61 = vand.u32 4294901760, %v619_v52 }
  0x3f   :  { %575 = vmatpush.msra.mxu3 %v1209_v53  ;;  %516 = vmatpush.msra.mxu2 %v329_v10  ;;  %v618_v53 = vld [vmem:[%s1710_s5 + $0x70] sm:$0xff]  ;;  %v613_v10 = vld [vmem:[%s1710_s5 + $0x48] sm:$0xff] }
  0x40   :  { %489 = vmatpush.msra.mxu1 %v1334_v56  ;;  %v1466_v62 = vand.u32 4294901760, %v618_v53  ;;  %v1489_v12 = vsub.f32 %v619_v52, %v1464_v61  ;;  %625 = vmatpush.msrb.mxu0 %v1464_v61 }
  0x41   :  { %577 = vmatpush.msra.mxu3 %v1211_v54  ;;  %520 = vmatpush.msra.mxu2 %v335_v11  ;;  %v617_v54 = vld [vmem:[%s1710_s5 + $0x68] sm:$0xff] }
  0x42   :  { %v1468_v63 = vand.u32 4294901760, %v617_v54  ;;  %627 = vmatpush.msrb.mxu0 %v1466_v62 }
  0x43   :  { %579 = vmatpush.msra.mxu3 %v1219_v60  ;;  %524 = vmatpush.msra.mxu2 %v341_v13  ;;  %v1492_v13 = vsub.f32 %v618_v53, %v1466_v62 }
  0x44   :  { %v1495_v14 = vsub.f32 %v617_v54, %v1468_v63  ;;  %629 = vmatpush.msrb.mxu0 %v1468_v63 }
  0x45   :  { %581 = vmatpush.msra.mxu3 %v1230_v0  ;;  %528 = vmatpush.msra.mxu2 %v347_v24  ;;  %v616_v0 = vld [vmem:[%s1710_s5 + $0x60] sm:$0xff] }
  0x47   :  { %583 = vmatpush.msra.mxu3 %v1235_v2  ;;  %532 = vmatpush.msra.mxu2 %v353_v37  ;;  %v614_v2 = vld [vmem:[%s1710_s5 + $0x50] sm:$0xff] }
  0x48   :  { %v1483_v9 = vand.u32 4294901760, %v614_v2 }
  0x49   :  { %585 = vmatpush.msra.mxu3 %v1237_v6  ;;  %536 = vmatpush.msra.mxu2 %v359_v3  ;;  %v1479_v6 = vand.u32 4294901760, %v616_v0  ;;  %v1507_v3 = vand.u32 4294901760, %v613_v10 }
  0x4a   :  { %v1505_v37 = vsub.f32 %v614_v2, %v1483_v9  ;;  %v609_v2 = vld [vmem:[%s1710_s5 + $0x28] sm:$0xff] }
  0x4b   :  { %587 = vmatpush.msra.mxu3 %v1239_v7  ;;  %540 = vmatpush.msra.mxu2 %v365_v43  ;;  %v1481_v7 = vand.u32 4294901760, %v615_v1  ;;  %v1499_v24 = vsub.f32 %v616_v0, %v1479_v6  ;;  %v679_v43 = vand.u32 4294901760, %v1495_v14 }
  0x4c   :  { %631 = vmatpush.msrb.mxu0 %v1479_v6 }
  0x4d   :  { %589 = vmatpush.msra.mxu3 %v1293_v38  ;;  %544 = vmatpush.msra.mxu2 %v371_v51  ;;  %v1502_v17 = vsub.f32 %v615_v1, %v1481_v7  ;;  %v685_v44 = vand.u32 4294901760, %v1499_v24  ;;  %v680_v55 = vsub.f32 %v1495_v14, %v679_v43 }
  0x4e   :  { %633 = vmatpush.msrb.mxu0 %v1481_v7 }
  0x4f   :  { %591 = vmatpush.msra.mxu3 %v1295_v39  ;;  %548 = vmatpush.msra.mxu2 %v377_v16  ;;  %v667_v39 = vand.u32 4294901760, %v1489_v12  ;;  %v691_v5 = vand.u32 4294901760, %v1502_v17  ;;  %v686_v59 = vsub.f32 %v1499_v24, %v685_v44  ;;  %v681_v29 = vand.u32 4294901760, %v680_v55 }
  0x50   :  { %635 = vmatpush.msrb.mxu0 %v1483_v9  ;;  %v1627_v55 = vand.u32 4294901760, %v607_v49 }
  0x51   :  { %593 = vmatpush.msra.mxu3 %v1304_v42  ;;  %552 = vmatpush.msra.mxu2 %v383_v22  ;;  %v673_v42 = vand.u32 4294901760, %v1492_v13  ;;  %v668_v50 = vsub.f32 %v1489_v12, %v667_v39  ;;  %v692_v22 = vsub.f32 %v1502_v17, %v691_v5  ;;  %v687_v40 = vand.u32 4294901760, %v686_v59 }
  0x52   :  { %637 = vmatpush.msrb.mxu0 %v1507_v3 }
  0x53   :  { %595 = vmatpush.msra.mxu3 %v1322_v48  ;;  %556 = vmatpush.msra.mxu2 %v389_v31  ;;  %v1516_v48 = vsub.f32 %v613_v10, %v1507_v3  ;;  %v674_v51 = vsub.f32 %v1492_v13, %v673_v42  ;;  %v669_v16 = vand.u32 4294901760, %v668_v50  ;;  %v1552_v31 = vand.u32 4294901760, %v611_v8 }
  0x54   :  { %v693_v47 = vand.u32 4294901760, %v692_v22  ;;  %639 = vmatpush.msrb.mxu0 %v1542_v21  ;;  %v1608_v10 = vand.u32 4294901760, %v609_v2  ;;  %v605_v22 = vld [vmem:[%s1710_s5 + $0x8] sm:$0xff] }
  0x55   :  { %597 = vmatpush.msra.mxu3 %v1334_v56  ;;  %560 = vmatpush.msra.mxu2 %v395_v33  ;;  %v697_v56 = vand.u32 4294901760, %v1505_v37  ;;  %v675_v58 = vand.u32 4294901760, %v674_v51  ;;  %v703_v23 = vand.u32 4294901760, %v1516_v48  ;;  %v1561_v4 = vsub.f32 %v611_v8, %v1552_v31  ;;  %v606_v8 = vld [vmem:[%s1710_s5 + $0x10] sm:$0xff] }
  0x56   :  { %670 = vmatpush.msrb.mxu1 %v669_v16  ;;  %641 = vmatpush.msrb.mxu0 %v1552_v31  ;;  %v1642_v59 = vand.u32 4294901760, %v606_v8 }
  0x57   :  { %v698_v32 = vsub.f32 %v1505_v37, %v697_v56 }
  0x58   :  { %676 = vmatpush.msrb.mxu1 %v675_v58  ;;  %643 = vmatpush.msrb.mxu0 %v1554_v25  ;;  %v1640_v58 = vsub.f32 %v607_v49, %v1627_v55 }
  0x5a   :  { %682 = vmatpush.msrb.mxu1 %v681_v29  ;;  %645 = vmatpush.msrb.mxu0 %v1608_v10 }
  0x5c   :  { %688 = vmatpush.msrb.mxu1 %v687_v40  ;;  %v744_v40 = vsub.f32 %v606_v8, %v1642_v59 }
  0x5e   :  { %694 = vmatpush.msrb.mxu1 %v693_v47  ;;  %v604_v47 = vld [vmem:[%s1710_s5] sm:$0xff] }
  0x91   :  { %v82_v19 = vpop.f32.mrf.mxu0 }
  0x92   :  { %v83_v20 = vadd.f32 %v998_v18, %v82_v19  ;;  %v704_v18 = vsub.f32 %v1516_v48, %v703_v23  ;;  %v715_v19 = vand.u32 4294901760, %v1561_v4 }
  0x95   :  { %v123_v26 = vpop.f32.mrf.mxu1  ;;  %v180_v34 = vpop.f32.mrf.mxu3 }
  0x96   :  { %v153_v27 = vpop.f32.mrf.mxu2  ;;  %v124_v28 = vadd.f32 %v123_v26, %v83_v20  ;;  %v699_v26 = vand.u32 4294901760, %v698_v32 }
  0x98   :  { %v154_v35 = vadd.f32 %v153_v27, %v124_v28  ;;  %v710_v27 = vsub.f32 %v1549_v30, %v709_v41  ;;  %v721_v28 = vand.u32 4294901760, %v1565_v45  ;;  %700 = vmatpush.msrb.mxu1 %v699_v26  ;;  %v745_v26 = vand.u32 4294901760, %v744_v40 }
  0x99   :  { %v213_v36 = vpop.f32.mrf.mxu0 }
  0x9a   :  { %v181_v60 = vadd.f32 %v180_v34, %v154_v35  ;;  %v705_v35 = vand.u32 4294901760, %v704_v18  ;;  %v711_v53 = vand.u32 4294901760, %v710_v27  ;;  %v722_v54 = vsub.f32 %v1565_v45, %v721_v28 }
  0x9b   :  { %v654_v27 = vand.u32 4294901760, %v604_v47 }
  0x9c   :  { %v214_v11 = vadd.f32 %v213_v36, %v181_v60  ;;  %v716_v36 = vsub.f32 %v1561_v4, %v715_v19  ;;  %706 = vmatpush.msrb.mxu1 %v705_v35  ;;  %v723_v1 = vand.u32 4294901760, %v722_v54 }
  0x9d   :  { %v238_v15 = vpop.f32.mrf.mxu1 }
  0x9e   :  { %v239_v38 = vadd.f32 %v238_v15, %v214_v11  ;;  %v717_v0 = vand.u32 4294901760, %v716_v36  ;;  %712 = vmatpush.msrb.mxu1 %v711_v53  ;;  %v608_v11 = vld [vmem:[%s1710_s5 + $0x20] sm:$0xff]  ;;  %v1614_v15 = vsub.f32 %v609_v2, %v1608_v10  ;;  %v746_v36 = vsub.f32 %v744_v40, %v745_v26 }
  0xa0   :  { %1001 = vtanh.f32 %v239_v38  ;;  %718 = vmatpush.msrb.mxu1 %v717_v0  ;;  %v1616_v38 = vand.u32 4294901760, %v608_v11  ;;  %v727_v50 = vand.u32 4294901760, %v1614_v15  ;;  %v747_v54 = vand.u32 4294901760, %v746_v36 }
  0xa2   :  { %724 = vmatpush.msrb.mxu1 %v723_v1  ;;  %v1625_v51 = vsub.f32 %v608_v11, %v1616_v38  ;;  %647 = vmatpush.msrb.mxu0 %v1616_v38  ;;  %v728_v57 = vsub.f32 %v1614_v15, %v727_v50 }
  0xa4   :  { %v733_v16 = vand.u32 4294901760, %v1625_v51  ;;  %649 = vmatpush.msrb.mxu0 %v1627_v55  ;;  %v729_v29 = vand.u32 4294901760, %v728_v57 }
  0xa6   :  { %v1002_v33 = vpop.eup %1001  ;;  %v734_v32 = vsub.f32 %v1625_v51, %v733_v16  ;;  %651 = vmatpush.msrb.mxu0 %v1642_v59  ;;  %730 = vmatpush.msrb.mxu1 %v729_v29 }
  0xa7   :  { %v294_v46 = vand.u32 4294901760, %v1002_v33 }
  0xa8   :  { %v735_v18 = vand.u32 4294901760, %v734_v32 }
  0xa9   :  { %400 = vmatmul.f32.vlgmr.msrb.gmra.mxu3 %v294_v46  ;;  %v295_v20 = vsub.f32 %v1002_v33, %v294_v46  ;;  %v739_v33 = vand.u32 4294901760, %v1640_v58 }
  0xaa   :  { %821 = vmatpush.msrb.mxu3 %v1464_v61  ;;  %736 = vmatpush.msrb.mxu1 %v735_v18 }
  0xab   :  { %454 = vmatmul.f32.vlgmr.msra.gmra.mxu0 %v295_v20  ;;  %v296_v34 = vand.u32 4294901760, %v295_v20 }
  0xac   :  { %823 = vmatpush.msrb.mxu3 %v1466_v62 }
  0xad   :  { %493 = vmatmul.f32.vlgmr.msra.gmra.mxu1 %v296_v34  ;;  %v297_v52 = vsub.f32 %v295_v20, %v296_v34  ;;  %v740_v20 = vsub.f32 %v1640_v58, %v739_v33 }
  0xae   :  { %825 = vmatpush.msrb.mxu3 %v1468_v63 }
  0xaf   :  { %v298_v60 = vand.u32 4294901760, %v297_v52  ;;  %v741_v35 = vand.u32 4294901760, %v740_v20  ;;  %v756_v52 = vsub.f32 %v604_v47, %v654_v27 }
  0xb0   :  { %827 = vmatpush.msrb.mxu3 %v1479_v6 }
  0xb1   :  { %299 = vmatmul.f32.vlgmr.msrb.gmra.mxu2 %v298_v60  ;;  %599 = vmatmul.f32.vlgmr.msra.gmra.mxu3 %v294_v46  ;;  %v757_v60 = vand.u32 4294901760, %v756_v52 }
  0xb2   :  { %768 = vmatpush.msrb.mxu2 %v1489_v12  ;;  %829 = vmatpush.msrb.mxu3 %v1481_v7 }
  0xb3   :  { %742 = vmatpush.msrb.mxu1 %v741_v35  ;;  %v758_v1 = vsub.f32 %v756_v52, %v757_v60 }
  0xb4   :  { %771 = vmatpush.msrb.mxu2 %v1492_v13  ;;  %831 = vmatpush.msrb.mxu3 %v1483_v9 }
  0xb5   :  { %748 = vmatpush.msrb.mxu1 %v747_v54  ;;  %v759_v11 = vand.u32 4294901760, %v758_v1 }
  0xb6   :  { %774 = vmatpush.msrb.mxu2 %v1495_v14  ;;  %833 = vmatpush.msrb.mxu3 %v1507_v3 }
  0xb8   :  { %777 = vmatpush.msrb.mxu2 %v1499_v24  ;;  %835 = vmatpush.msrb.mxu3 %v1542_v21 }
  0xb9   :  { %562 = vmatmul.f32.vlgmr.msra.gmra.mxu2 %v294_v46  ;;  %v652_v46 = vand.u32 4294901760, %v605_v22 }
  0xba   :  { %780 = vmatpush.msrb.mxu2 %v1502_v17  ;;  %837 = vmatpush.msrb.mxu3 %v1552_v31 }
  0xbb   :  { %v750_v34 = vsub.f32 %v605_v22, %v652_v46  ;;  %653 = vmatpush.msrb.mxu0 %v652_v46 }
  0xbc   :  { %783 = vmatpush.msrb.mxu2 %v1505_v37  ;;  %839 = vmatpush.msrb.mxu3 %v1554_v25 }
  0xbd   :  { %v751_v53 = vand.u32 4294901760, %v750_v34  ;;  %655 = vmatpush.msrb.mxu0 %v654_v27 }
  0xbe   :  { %786 = vmatpush.msrb.mxu2 %v1516_v48  ;;  %841 = vmatpush.msrb.mxu3 %v1608_v10 }
  0xbf   :  { %862 = vmatpush.msra.mxu0 %v667_v39  ;;  %v752_v0 = vsub.f32 %v750_v34, %v751_v53 }
  0xc0   :  { %789 = vmatpush.msrb.mxu2 %v1549_v30  ;;  %843 = vmatpush.msrb.mxu3 %v1616_v38 }
  0xc1   :  { %866 = vmatpush.msra.mxu0 %v673_v42  ;;  %v753_v2 = vand.u32 4294901760, %v752_v0 }
  0xc2   :  { %792 = vmatpush.msrb.mxu2 %v1561_v4  ;;  %845 = vmatpush.msrb.mxu3 %v1627_v55 }
  0xc3   :  { %870 = vmatpush.msra.mxu0 %v679_v43  ;;  %754 = vmatpush.msrb.mxu1 %v753_v2 }
  0xc4   :  { %795 = vmatpush.msrb.mxu2 %v1565_v45  ;;  %847 = vmatpush.msrb.mxu3 %v1642_v59 }
  0xc5   :  { %874 = vmatpush.msra.mxu0 %v685_v44  ;;  %760 = vmatpush.msrb.mxu1 %v759_v11 }
  0xc6   :  { %798 = vmatpush.msrb.mxu2 %v1614_v15  ;;  %849 = vmatpush.msrb.mxu3 %v652_v46 }
  0xc7   :  { %929 = vmatpush.msra.mxu1 %v1464_v61  ;;  %878 = vmatpush.msra.mxu0 %v691_v5  ;;  %v999_v61 = vld [vmem:[%s1709_s4] ss:$0 sm:$0xff] }
  0xc8   :  { %801 = vmatpush.msrb.mxu2 %v1625_v51  ;;  %851 = vmatpush.msrb.mxu3 %v654_v27 }
  0xc9   :  { %931 = vmatpush.msra.mxu1 %v1466_v62  ;;  %882 = vmatpush.msra.mxu0 %v697_v56  ;;  %v1000_v56 = vld [vmem:[%s1711_s6] ss:$0 sm:$0xff]  ;;  %s1064_s6 = smov [#allocation5]  }
  0xca   :  { %804 = vmatpush.msrb.mxu2 %v1640_v58  ;;  %s982_s22 = sshll.u32 %s1064_s6, 4  ;;  %s983_s22 = int_to_ptr.vmem [resolvable:$true] %s982_s22 }
  0xcb   :  { %933 = vmatpush.msra.mxu1 %v1468_v63  ;;  %886 = vmatpush.msra.mxu0 %v703_v23 }
  0xcc   :  { %807 = vmatpush.msrb.mxu2 %v744_v40 }
  0xcd   :  { %935 = vmatpush.msra.mxu1 %v1479_v6  ;;  %890 = vmatpush.msra.mxu0 %v709_v41 }
  0xce   :  { %810 = vmatpush.msrb.mxu2 %v750_v34 }
  0xcf   :  { %937 = vmatpush.msra.mxu1 %v1481_v7  ;;  %894 = vmatpush.msra.mxu0 %v715_v19 }
  0xd0   :  { %813 = vmatpush.msrb.mxu2 %v756_v52 }
  0xd1   :  { %939 = vmatpush.msra.mxu1 %v1483_v9  ;;  %898 = vmatpush.msra.mxu0 %v721_v28 }
  0xd3   :  { %941 = vmatpush.msra.mxu1 %v1507_v3  ;;  %902 = vmatpush.msra.mxu0 %v727_v50 }
  0xd5   :  { %943 = vmatpush.msra.mxu1 %v1542_v21  ;;  %906 = vmatpush.msra.mxu0 %v733_v16 }
  0xd7   :  { %945 = vmatpush.msra.mxu1 %v1552_v31  ;;  %910 = vmatpush.msra.mxu0 %v739_v33 }
  0xd9   :  { %947 = vmatpush.msra.mxu1 %v1554_v25  ;;  %914 = vmatpush.msra.mxu0 %v745_v26 }
  0xdb   :  { %949 = vmatpush.msra.mxu1 %v1608_v10  ;;  %918 = vmatpush.msra.mxu0 %v751_v53 }
  0xdd   :  { %951 = vmatpush.msra.mxu1 %v1616_v38  ;;  %922 = vmatpush.msra.mxu0 %v757_v60 }
  0xdf   :  { %953 = vmatpush.msra.mxu1 %v1627_v55 }
  0xe1   :  { %955 = vmatpush.msra.mxu1 %v1642_v59 }
  0xe3   :  { %957 = vmatpush.msra.mxu1 %v652_v46 }
  0xe5   :  { %959 = vmatpush.msra.mxu1 %v654_v27 }
 0x128   :  { %v455_v9 = vpop.f32.mrf.mxu0 }
 0x12a   :  { %v494_v13 = vpop.f32.mrf.mxu1 }
 0x12c   :  { %v401_v62 = vpop.f32.mrf.mxu3 }
 0x134   :  { %v300_v63 = vpop.f32.mrf.mxu2  ;;  %v600_v37 = vpop.f32.mrf.mxu3 }
 0x135   :  { %v301_v6 = vadd.f32 %v999_v61, %v300_v63 }
 0x137   :  { %v402_v7 = vadd.f32 %v401_v62, %v301_v6 }
 0x139   :  { %v456_v12 = vadd.f32 %v455_v9, %v402_v7 }
 0x13b   :  { %v495_v14 = vadd.f32 %v494_v13, %v456_v12 }
 0x13c   :  { %v563_v24 = vpop.f32.mrf.mxu2 }
 0x13d   :  { %v564_v17 = vadd.f32 %v563_v24, %v495_v14 }
 0x13f   :  { %v601_v3 = vadd.f32 %v600_v37, %v564_v17 }
 0x141   :  { %1003 = vtanh.f32 %v601_v3 }
 0x147   :  { %v1004_v39 = vpop.eup %1003 }
 0x148   :  { %v656_v42 = vand.u32 4294901760, %v1004_v39 }
 0x14a   :  { %762 = vmatmul.f32.vlgmr.msrb.gmra.mxu1 %v656_v42  ;;  %v657_v43 = vsub.f32 %v1004_v39, %v656_v42 }
 0x14c   :  { %816 = vmatmul.f32.vlgmr.msrb.gmra.mxu2 %v657_v43  ;;  %v658_v44 = vand.u32 4294901760, %v657_v43 }
 0x14e   :  { %855 = vmatmul.f32.vlgmr.msrb.gmra.mxu3 %v658_v44  ;;  %v659_v5 = vsub.f32 %v657_v43, %v658_v44 }
 0x150   :  { %v660_v48 = vand.u32 4294901760, %v659_v5 }
 0x152   :  { %661 = vmatmul.f32.vlgmr.msrb.gmra.mxu0 %v660_v48  ;;  %961 = vmatmul.f32.vlgmr.msra.gmra.mxu1 %v656_v42 }
 0x15a   :  { %924 = vmatmul.f32.vlgmr.msra.gmra.mxu0 %v656_v42 }
 0x1c7   :  { %v763_v21 = vpop.f32.mrf.mxu1 }
 0x1cf   :  { %v662_v23 = vpop.f32.mrf.mxu0  ;;  %v817_v25 = vpop.f32.mrf.mxu2 }
 0x1d0   :  { %v663_v30 = vadd.f32 %v1000_v56, %v662_v23  ;;  %v962_v10 = vpop.f32.mrf.mxu1 }
 0x1d1   :  { %v856_v4 = vpop.f32.mrf.mxu3 }
 0x1d2   :  { %v764_v31 = vadd.f32 %v763_v21, %v663_v30 }
 0x1d4   :  { %v818_v41 = vadd.f32 %v817_v25, %v764_v31 }
 0x1d6   :  { %v857_v45 = vadd.f32 %v856_v4, %v818_v41 }
 0x1d7   :  { %v925_v19 = vpop.f32.mrf.mxu0 }
 0x1d8   :  { %v926_v28 = vadd.f32 %v925_v19, %v857_v45 }
 0x1da   :  { %v963_v15 = vadd.f32 %v962_v10, %v926_v28 }
 0x1dc   :  { %v965_v38 = vand.u32 2147483647, %v963_v15  ;;  %v969_v57 = vmax.f32 %v963_v15, 0.0 }
 0x1de   :  { %v966_v49 = vsub.f32 0.0, %v965_v38 }
 0x1e0   :  { %v967_v50 = vmul.f32 1.442695, %v966_v49 }
 0x1e2   :  { %1005 = vpow2.f32 %v967_v50 }
 0x1e8   :  { %v1006_v51 = vpop.eup %1005 }
 0x1e9   :  { %v970_v55 = vadd.f32 1.0, %v1006_v51 }
 0x1eb   :  { %1007 = vlog2.f32 %v970_v55 }
 0x1f1   :  { %v1008_v8 = vpop.eup %1007 }
 0x1f2   :  { %v972_v16 = vmul.f32 0.6931472, %v1008_v8 }
 0x1f4   :  { %v973_v58 = vadd.f32 %v972_v16, %v969_v57 }
 0x1f6   :  { %v974_v59 = vadd.f32 1.0, %v973_v58 }
 0x1f8   :  { %976 = vst.msk [vmem:[#allocation5] sm:$0x3] %vm975_vm1, %v974_v59 }
 0x1f9   :  { %987 = dma.vmem_to_hbm [thread:$0]  %s983_s22, 32, %s985_s25, [#allocation4]  }
 0x1fa   :  { %1059 = dma.done.wait [#allocation4], 32  }
 0x1fb   :  { %1060 = vsyncadd [#allocation4], 4294967264 }
 0x1fc   :  { %992 = vsyncpa [#allocation3], 1 }
 0x1fd   :  { %993 = vsyncpa [#allocation4], 1 }

</bundles_post_ra>
